<compile_context>
chip_gen: v6e
topology: v6e:2x2x1
jax: 0.10.0
libtpu: 0.0.40
codegen_flags: <defaults>
</compile_context>

<pallas_src>
import functools

import jax
import jax.numpy as jnp
from jax import lax
from jax.experimental import pallas as pl
from jax.experimental.pallas import tpu as pltpu

_LANE = 128
_CHUNK_LANES = 1024          # inner-loop chunk width (8 f32 vregs per operand)


def _l2dist_kernel(x1_ref, x2_ref, o_ref, acc_ref, *, p, tf, cw, aw,
                   n_chunks, nk2, feat_len, needs_mask):
    # Grid: (reduction split [parallel], batch tiles [parallel],
    #        feature tiles within split [arbitrary/reduction]).
    s = pl.program_id(0)
    k = pl.program_id(2)
    tile = s * nk2 + k                    # logical feature-tile index
    tb = acc_ref.shape[0]

    @pl.when(k == 0)
    def _():
        acc_ref[...] = jnp.zeros_like(acc_ref)

    if needs_mask:
        # Hoisted once per grid step; per-chunk mask is a scalar compare.
        lane_iota = lax.broadcasted_iota(jnp.int32, (tb, cw), 1)
        base = tile * tf

    def body(c, acc):
        off = pl.multiple_of(c * cw, cw)
        d = (x1_ref[:, pl.ds(off, cw)].astype(jnp.float32)
             - x2_ref[:, pl.ds(off, cw)].astype(jnp.float32))
        if p == 2.0:
            term = d * d                          # no abs, no transcendental
        elif p == 1.0:
            term = jnp.abs(d)
        elif float(p).is_integer() and 2.0 < p <= 8.0:
            ad = jnp.abs(d)                       # repeated multiplies: VPU only
            term = ad * ad
            for _ in range(int(p) - 2):
                term = term * ad
        else:
            ad = jnp.abs(d)
            # Guard the exp(p*log(0)) lowering path on exact-zero diffs.
            term = jnp.where(ad > 0, ad ** p, 0.0)
        if needs_mask:
            limit = feat_len - base - c * cw      # scalar; columns >= F -> 0
            term = jnp.where(lane_iota < limit, term, 0.0)
        # Fold lane groups into one vreg-wide partial: pure VALU, no XLU.
        folded = term[:, 0:aw]
        for g in range(1, cw // aw):
            folded = folded + term[:, g * aw:(g + 1) * aw]
        return acc + folded

    init = jnp.zeros((tb, aw), jnp.float32)
    if n_chunks >= 4 and n_chunks % 2 == 0:
        partial = lax.fori_loop(0, n_chunks, body, init, unroll=2)
    else:
        partial = lax.fori_loop(0, n_chunks, body, init)
    acc_ref[...] += partial                       # 4 KiB RMW per grid step

    @pl.when(k == pl.num_programs(2) - 1)
    def _():
        # Single cross-lane reduce per (split, batch tile); eps + root are
        # applied in the wrapper after combining the split partials.
        o_ref[...] = jnp.sum(acc_ref[...], axis=1,
                             keepdims=True)[None].astype(o_ref.dtype)


def _vmem_capacity_bytes():
    try:
        info = pltpu.get_tpu_info()
        cap = getattr(info, "vmem_capacity_bytes", None)
        if cap:
            return int(cap)
    except Exception:
        pass
    return 64 * 1024 * 1024                        # conservative (v7x-safe)


def l2dist(x1, x2, p=2.0, *, block_bytes_per_input=None):
    """Pallas implementation of L2dist.forward. Returns shape (B,) float32."""
    assert x1.shape == x2.shape
    B = x1.shape[0]
    x1f = x1.reshape(B, -1)                        # flat view; no relayout copy
    x2f = x2.reshape(B, -1)
    F = x1f.shape[1]
    eps = 0.0001 / B
    itemsize = jnp.dtype(x1f.dtype).itemsize

    # Generation-aware sizing: 64 MiB VMEM parts (v7x) vs 128 MiB (v5e/v6e).
    vmem_cap = _vmem_capacity_bytes()
    small_vmem = vmem_cap <= 64 * 1024 * 1024
    if block_bytes_per_input is None:
        block_bytes_per_input = (6 << 20) if small_vmem else (12 << 20)
    vmem_limit = (44 << 20) if small_vmem else (80 << 20)

    # Batch tiling: dtype-native sublane packing (8 f32 / 16 bf16 / 32 int8).
    sub = 8 * max(1, 4 // itemsize)
    if B <= sub:
        tb, nb = B, 1                              # full-dim block, any B
    else:
        tb, nb = sub, pl.cdiv(B, sub)              # partial last tile -> masked writes

    # Feature tiling over the flat array: tf is a multiple of the chunk width
    # and never exceeds the (128-floored) feature extent, so padding overhead
    # is bounded by one partial tile handled via the in-kernel mask.
    if F < _LANE:
        cw = tf = F
    else:
        f128 = (F // _LANE) * _LANE
        cw = min(_CHUNK_LANES, f128)
        tf_cap = max(cw, (block_bytes_per_input // (tb * itemsize)) // cw * cw)
        tf = max(cw, min(tf_cap, (f128 // cw) * cw))
    nk = pl.cdiv(F, tf)
    aw = min(_LANE, cw)
    n_chunks = tf // cw

    # 2-way reduction split when there is only one batch tile, so v7x's two
    # TensorCores both get work (harmless extra grid step on 1-core chips).
    ns = 2 if (nb == 1 and nk >= 2) else 1
    nk2 = pl.cdiv(nk, ns)
    needs_mask = (ns * nk2 * tf) != F

    def x_index(s, b, k):
        t = s * nk2 + k
        return (b, jnp.minimum(t, nk - 1))         # clamp overrun tiles (masked to 0)

    kernel = functools.partial(
        _l2dist_kernel, p=float(p), tf=tf, cw=cw, aw=aw, n_chunks=n_chunks,
        nk2=nk2, feat_len=F, needs_mask=needs_mask)

    partials = pl.pallas_call(
        kernel,
        out_shape=jax.ShapeDtypeStruct((ns, B, 1), jnp.float32),
        grid_spec=pltpu.PrefetchScalarGridSpec(
            num_scalar_prefetch=0,
            grid=(ns, nb, nk2),
            in_specs=[
                pl.BlockSpec((tb, tf), x_index),
                pl.BlockSpec((tb, tf), x_index),
            ],
            out_specs=pl.BlockSpec((1, tb, 1), lambda s, b, k: (s, b, 0)),
            scratch_shapes=[pltpu.VMEM((tb, aw), jnp.float32)],
        ),
        compiler_params=pltpu.CompilerParams(
            dimension_semantics=("parallel", "parallel", "arbitrary"),
            vmem_limit_bytes=vmem_limit,
        ),
    )(x1f, x2f)

    total = jnp.sum(partials[..., 0], axis=0)      # combine split partial sums
    return (total + eps) ** (1.0 / float(p))


def l2dist_ref(x1, x2, p=2.0):
    """Pure-JAX reference mirroring the PyTorch module."""
    B = x1.shape[0]
    eps = 0.0001 / B
    diff = jnp.abs(x1 - x2).reshape(B, -1).astype(jnp.float32)
    return (jnp.sum(diff ** p, axis=-1) + eps) ** (1.0 / p)


def _check(out, ref):
    assert out.shape == ref.shape, (out.shape, ref.shape)
    assert jnp.allclose(out, ref, rtol=2e-4, atol=1e-5), (out, ref)


if __name__ == "__main__":
    key = jax.random.PRNGKey(0)
    k1, k2, k3, k4, k5, k6 = jax.random.split(key, 6)

    # Small NCHW inputs consistent with a conv-feature distance use case.
    B, C, H, W = 2, 4, 16, 16
    x1 = jax.random.normal(k1, (B, C, H, W), dtype=jnp.float32)
    x2 = jax.random.normal(k2, (B, C, H, W), dtype=jnp.float32)

    # p = 2 fast path (the module's usual configuration).
    out2 = jax.block_until_ready(l2dist(x1, x2, p=2.0))
    _check(out2, l2dist_ref(x1, x2, p=2.0))

    # Integer-p fast path (repeated multiplies) and generic non-integer p.
    out3 = jax.block_until_ready(l2dist(x1, x2, p=3.0))
    _check(out3, l2dist_ref(x1, x2, p=3.0))
    outg = jax.block_until_ready(l2dist(x1, x2, p=2.5))
    _check(outg, l2dist_ref(x1, x2, p=2.5))

    # Ragged feature length + forced multi-tile reduction: exercises the
    # in-kernel lane mask, partial feature tiles and the 2-way reduction split.
    y1 = jax.random.normal(k3, (3, 5, 7, 11), dtype=jnp.float32)
    y2 = jax.random.normal(k4, (3, 5, 7, 11), dtype=jnp.float32)
    outr = jax.block_until_ready(l2dist(y1, y2, p=2.0, block_bytes_per_input=4096))
    _check(outr, l2dist_ref(y1, y2, p=2.0))

    # Batch not a multiple of the sublane packing: exercises the masked
    # partial batch tile (no batch padding copy).
    z1 = jax.random.normal(k5, (10, 4, 16, 16), dtype=jnp.float32)
    z2 = jax.random.normal(k6, (10, 4, 16, 16), dtype=jnp.float32)
    outb = jax.block_until_ready(l2dist(z1, z2, p=2.0))
    _check(outb, l2dist_ref(z1, z2, p=2.0))

    print("KERNEL_OK")
</pallas_src>

<mosaic_0001>
module attributes {stable_mosaic.version = 11 : i64} {
  func.func @_l2dist_kernel(%arg0: i32, %arg1: i32, %arg2: i32, %arg3: memref<2x1024xf32, #tpu.memory_space<vmem>>, %arg4: memref<2x1024xf32, #tpu.memory_space<vmem>>, %arg5: memref<1x2x1xf32, #tpu.memory_space<vmem>>, %arg6: memref<2x128xf32, #tpu.memory_space<vmem>>) attributes {dimension_semantics = [#tpu.dimension_semantics<parallel>, #tpu.dimension_semantics<parallel>, #tpu.dimension_semantics<arbitrary>], iteration_bounds = array<i64: 1, 1, 1>, scalar_prefetch = 0 : i64, scratch_operands = 1 : i64, tpu.core_type = #tpu.core_type<tc>, window_params = [{transform_indices = @transform_0, window_bounds = array<i64: 2, 1024>}, {transform_indices = @transform_1, window_bounds = array<i64: 2, 1024>}, {transform_indices = @transform_2, window_bounds = array<i64: 1, 2, 1>}]} {
    %c0_i32 = arith.constant 0 : i32
    %0 = arith.cmpi eq, %arg2, %c0_i32 : i32
    %1 = arith.extui %0 : i1 to i32
    %c0_i32_0 = arith.constant 0 : i32
    %2 = arith.cmpi ne, %1, %c0_i32_0 : i32
    scf.if %2 {
      %cst_9 = arith.constant 0.000000e+00 : f32
      %34 = vector.broadcast %cst_9 : f32 to vector<2x128xf32>
      %c0_10 = arith.constant 0 : index
      %c0_11 = arith.constant 0 : index
      %35 = vector.load %arg6[%c0_10, %c0_11] : memref<2x128xf32, #tpu.memory_space<vmem>>, vector<2x128xf32>
      tpu.vector_store %arg6[%c0_10, %c0_11], %34 {strides = array<i32>} : memref<2x128xf32, #tpu.memory_space<vmem>>, vector<2x128xf32>,
    } else {
    }
    %cst = arith.constant 0.000000e+00 : f32
    %3 = vector.broadcast %cst : f32 to vector<2x128xf32>
    %c0_i32_1 = arith.constant 0 : i32
    %c1024_i32 = arith.constant 1024 : i32
    %4 = arith.muli %c0_i32_1, %c1024_i32 : i32
    %5 = tpu.assume_multiple %4, 1024 : i32
    %c0 = arith.constant 0 : index
    %6 = arith.index_cast %5 : i32 to index
    %7 = vector.load %arg3[%c0, %6] : memref<2x1024xf32, #tpu.memory_space<vmem>>, vector<2x1024xf32>
    %c0_2 = arith.constant 0 : index
    %8 = arith.index_cast %5 : i32 to index
    %9 = vector.load %arg4[%c0_2, %8] : memref<2x1024xf32, #tpu.memory_space<vmem>>, vector<2x1024xf32>
    %10 = arith.subf %7, %9 : vector<2x1024xf32>
    %11 = arith.mulf %10, %10 : vector<2x1024xf32>
    %12 = vector.extract_strided_slice %11 {offsets = [0, 0], sizes = [2, 128], strides = [1, 1]} : vector<2x1024xf32> to vector<2x128xf32>
    %13 = vector.extract_strided_slice %11 {offsets = [0, 128], sizes = [2, 128], strides = [1, 1]} : vector<2x1024xf32> to vector<2x128xf32>
    %14 = arith.addf %12, %13 : vector<2x128xf32>
    %15 = vector.extract_strided_slice %11 {offsets = [0, 256], sizes = [2, 128], strides = [1, 1]} : vector<2x1024xf32> to vector<2x128xf32>
    %16 = arith.addf %14, %15 : vector<2x128xf32>
    %17 = vector.extract_strided_slice %11 {offsets = [0, 384], sizes = [2, 128], strides = [1, 1]} : vector<2x1024xf32> to vector<2x128xf32>
    %18 = arith.addf %16, %17 : vector<2x128xf32>
    %19 = vector.extract_strided_slice %11 {offsets = [0, 512], sizes = [2, 128], strides = [1, 1]} : vector<2x1024xf32> to vector<2x128xf32>
    %20 = arith.addf %18, %19 : vector<2x128xf32>
    %21 = vector.extract_strided_slice %11 {offsets = [0, 640], sizes = [2, 128], strides = [1, 1]} : vector<2x1024xf32> to vector<2x128xf32>
    %22 = arith.addf %20, %21 : vector<2x128xf32>
    %23 = vector.extract_strided_slice %11 {offsets = [0, 768], sizes = [2, 128], strides = [1, 1]} : vector<2x1024xf32> to vector<2x128xf32>
    %24 = arith.addf %22, %23 : vector<2x128xf32>
    %25 = vector.extract_strided_slice %11 {offsets = [0, 896], sizes = [2, 128], strides = [1, 1]} : vector<2x1024xf32> to vector<2x128xf32>
    %26 = arith.addf %24, %25 : vector<2x128xf32>
    %27 = arith.addf %3, %26 : vector<2x128xf32>
    %c1_i32 = arith.constant 1 : i32
    %c0_3 = arith.constant 0 : index
    %c0_4 = arith.constant 0 : index
    %28 = vector.load %arg6[%c0_3, %c0_4] : memref<2x128xf32, #tpu.memory_space<vmem>>, vector<2x128xf32>
    %29 = arith.addf %28, %27 : vector<2x128xf32>
    %c0_5 = arith.constant 0 : index
    %c0_6 = arith.constant 0 : index
    %30 = vector.load %arg6[%c0_5, %c0_6] : memref<2x128xf32, #tpu.memory_space<vmem>>, vector<2x128xf32>
    tpu.vector_store %arg6[%c0_5, %c0_6], %29 {strides = array<i32>} : memref<2x128xf32, #tpu.memory_space<vmem>>, vector<2x128xf32>,
    %c0_i32_7 = arith.constant 0 : i32
    %31 = arith.cmpi eq, %arg2, %c0_i32_7 : i32
    %32 = arith.extui %31 : i1 to i32
    %c0_i32_8 = arith.constant 0 : i32
    %33 = arith.cmpi ne, %32, %c0_i32_8 : i32
    scf.if %33 {
      %c0_9 = arith.constant 0 : index
      %c0_10 = arith.constant 0 : index
      %34 = vector.load %arg6[%c0_9, %c0_10] : memref<2x128xf32, #tpu.memory_space<vmem>>, vector<2x128xf32>
      %cst_11 = arith.constant dense<0.000000e+00> : vector<2xf32>
      %35 = vector.multi_reduction <add>, %34, %cst_11 [1] : vector<2x128xf32> to vector<2xf32>
      %36 = vector.shape_cast %35 : vector<2xf32> to vector<2x1xf32>
      %37 = vector.shape_cast %36 : vector<2x1xf32> to vector<1x2x1xf32>
      %c0_12 = arith.constant 0 : index
      %c0_13 = arith.constant 0 : index
      %c0_14 = arith.constant 0 : index
      %38 = vector.load %arg5[%c0_12, %c0_13, %c0_14] : memref<1x2x1xf32, #tpu.memory_space<vmem>>, vector<1x2x1xf32>
      tpu.vector_store %arg5[%c0_12, %c0_13, %c0_14], %37 {strides = array<i32>} : memref<1x2x1xf32, #tpu.memory_space<vmem>>, vector<1x2x1xf32>,
    } else {
    }
    return
  }
  func.func @transform_0(%arg0: i32, %arg1: i32, %arg2: i32) -> (i32, i32) {
    %c1_i32 = arith.constant 1 : i32
    %0 = arith.muli %arg0, %c1_i32 : i32
    %1 = arith.addi %0, %arg2 : i32
    %c0_i32 = arith.constant 0 : i32
    %2 = arith.minsi %1, %c0_i32 : i32
    %c0_i32_0 = arith.constant 0 : i32
    return %arg1, %2 : i32, i32
  }
  func.func @transform_1(%arg0: i32, %arg1: i32, %arg2: i32) -> (i32, i32) {
    %c1_i32 = arith.constant 1 : i32
    %0 = arith.muli %arg0, %c1_i32 : i32
    %1 = arith.addi %0, %arg2 : i32
    %c0_i32 = arith.constant 0 : i32
    %2 = arith.minsi %1, %c0_i32 : i32
    %c0_i32_0 = arith.constant 0 : i32
    return %arg1, %2 : i32, i32
  }
  func.func @transform_2(%arg0: i32, %arg1: i32, %arg2: i32) -> (i32, i32, i32) {
    %c0_i32 = arith.constant 0 : i32
    %c0_i32_0 = arith.constant 0 : i32
    return %arg0, %arg1, %c0_i32 : i32, i32, i32
  }
}

</mosaic_0001>

<bundles_post_ra>
// kernel: tpu_custom_call.1
= control target key start
LH: loop header
LB: loop body
LE: loop exit
PB: predicated region body
PF: predicated region fallthrough
CT: control target
= control target key end

     0   :  { %7 = vsyncpa [#allocation4], 0  ;;  %s187_s0 = inlined_call_operand.hbm [shape: f32[2,1024], index: 0, kind: input, shape index: {}]   ;;  %s188_s1 = inlined_call_operand.hbm [shape: f32[2,1024], index: 1, kind: input, shape index: {}]   ;;  %s189_s2 = inlined_call_operand.vmem [shape: f32[1,2,1], index: 2, kind: output, shape index: {}]  }
   0x1   :  { %8 = vsyncpa [#allocation6], 0  ;;  %s160_s9 = smov [#allocation3]   ;;  %s161_s11 = smov [#allocation5]  }
   0x2   :  { %s21_s10 = sshll.u32 %s160_s9, 4  ;;  %s37_s12 = sshll.u32 %s161_s11, 4  ;;  %s22_s10 = int_to_ptr.vmem [resolvable:$true] %s21_s10  ;;  %s38_s12 = int_to_ptr.vmem [resolvable:$true] %s37_s12 }
   0x3   :  { %s124_s13 = scalar_lea.vmem %s22_s10, 256  ;;  %p129_p1 = scmp.lt.s32.totalorder %s22_s10, %s22_s10 }
   0x4   :  { %p125_p0 = scmp.ne.s32.totalorder %s22_s10, %s124_s13  ;;  %p130_p2 = scmp.lt.s32.totalorder %s124_s13, %s124_s13 }
   0x6   :  { %p131_p3 = por %p130_p2, %p129_p1 }
   0x8   :  { %p132_p4 = pnand %p131_p3, %p125_p0 }
   0xa   :  { %135 = shalt.err (!%p132_p4)
}
   0xb   :  { %24 = dma.hbm_to_vmem [thread:$0]  %s187_s0, 256, %s22_s10, [#allocation4]  }
   0xc   :  { %s144_s16 = scalar_lea.vmem %s38_s12, 256  ;;  %p149_p6 = scmp.lt.s32.totalorder %s38_s12, %s38_s12 }
   0xd   :  { %p145_p5 = scmp.ne.s32.totalorder %s38_s12, %s144_s16  ;;  %p150_p7 = scmp.lt.s32.totalorder %s144_s16, %s144_s16 }
   0xf   :  { %p151_p8 = por %p150_p7, %p149_p6 }
  0x11   :  { %p152_p9 = pnand %p151_p8, %p145_p5 }
  0x13   :  { %155 = shalt.err (!%p152_p9)
}
  0x14   :  { %40 = dma.hbm_to_vmem [thread:$0]  %s188_s1, 256, %s38_s12, [#allocation6]  }
  0x15   :  { %156 = dma.done.wait [#allocation4], 256  }
  0x16   :  { %157 = vsyncadd [#allocation4], 4294967040 }
  0x17   :  { %158 = dma.done.wait [#allocation6], 256  }
  0x18   :  { %159 = vsyncadd [#allocation6], 4294967040  ;;  %v162_v0 = vmov 0.0   ;;  %v60_v1 = vld [vmem:[#allocation3] sm:$0xff]  ;;  %v61_v2 = vld [vmem:[#allocation3 + $0x8] sm:$0xff]  ;;  %vm97_vm0 = vcmask 1041408  }
  0x19   :  { %59 = vst [vmem:[#allocation2] sm:$0x3] %v162_v0  ;;  %v62_v3 = vld [vmem:[#allocation5] sm:$0xff]  ;;  %v63_v4 = vld [vmem:[#allocation5 + $0x8] sm:$0xff]  ;;  %vm101_vm1 = vcmask 1024  }
  0x1a   :  { %v64_v5 = vsub.f32 %v60_v1, %v62_v3  ;;  %v65_v6 = vsub.f32 %v61_v2, %v63_v4 }
  0x1c   :  { %v66_v7 = vmul.f32 %v64_v5, %v64_v5  ;;  %v67_v10 = vmul.f32 %v65_v6, %v65_v6 }
  0x1e   :  { %v69_v8 = vrot.slane %v66_v7, 2  ;;  %v72_v9 = vrot.slane %v66_v7, 4  ;;  %v75_v12 = vrot.slane %v66_v7, 6  ;;  %v80_v15 = vrot.slane %v67_v10, 2 }
  0x1f   :  { %v83_v17 = vrot.slane %v67_v10, 4  ;;  %v86_v19 = vrot.slane %v67_v10, 6 }
  0x20   :  { %v71_v11 = vadd.f32 %v69_v8, %v66_v7  ;;  %v90_v21 = vld [vmem:[#allocation2] sm:$0x3] }
  0x22   :  { %v74_v13 = vadd.f32 %v72_v9, %v71_v11 }
  0x24   :  { %v77_v14 = vadd.f32 %v75_v12, %v74_v13 }
  0x26   :  { %v78_v16 = vadd.f32 %v77_v14, %v67_v10 }
  0x28   :  { %v82_v18 = vadd.f32 %v80_v15, %v78_v16 }
  0x2a   :  { %v85_v20 = vadd.f32 %v83_v17, %v82_v18 }
  0x2c   :  { %v88_v22 = vadd.f32 %v86_v19, %v85_v20 }
  0x2e   :  { %v91_v23 = vadd.f32 %v90_v21, %v88_v22 }
  0x30   :  { %92 = vst [vmem:[#allocation2] sm:$0x3] %v91_v23 }
  0x37   :  { %v96_v24 = vld [vmem:[#allocation2] sm:$0x3] }
  0x38   :  { %v98_v25 = vsel %vm97_vm0, %v96_v24, 0.0 }
  0x39   :  { %99 = vadd.xlane.f32.xlu0 %v98_v25 }
  0xc2   :  { %v100_v26 = vpop.xlane.xlu0 %99 }
  0xc3   :  { %102 = vst.msk [vmem:[%s189_s2] sm:$0x3] %vm101_vm1, %v100_v26 }
  0xc4   :  { %107 = vsyncpa [#allocation4], 1 }
  0xc5   :  { %108 = vsyncpa [#allocation6], 1 }

</bundles_post_ra>
